<compile_context>
chip_gen: v7x
topology: tpu7x:2x2x1
jax: 0.10.0
libtpu: 0.0.40
codegen_flags: <defaults>
</compile_context>

<pallas_src>
import functools

import jax
import jax.numpy as jnp
from jax import lax
from jax.experimental import pallas as pl
from jax.experimental.pallas import tpu as pltpu


def _aff_kernel(x_ref, mask_ref, w1_ref, b1_ref, w2_ref, b2_ref, o_ref, *, Wp):
    """One batch image per grid step (channels-first, spatial flattened on lanes).

    x_ref   : (1, Cin,  Hp*Wp)   spatially zero-padded, pre-concatenated input
    mask_ref: (1, Hp*Wp)         1.0 on interior pixels, 0.0 on the 1-px halo
    w1_ref  : (Cout, Cin)        1x1-conv weight
    b1_ref  : (Cout, 1)          1x1-conv bias
    w2_ref  : (Cout, 9*Cout)     3x3-conv weight, columns ordered (ky, kx, cin)
    b2_ref  : (Cout, 1)          3x3-conv bias
    o_ref   : (1, Cout, Hp*Wp)   conv2 output on the padded grid (halo lanes
                                 are don't-care; wrapper slices the interior)
    """
    f32 = jnp.float32

    # ---- 1x1 conv + bias + ReLU: ONE MXU matmul ---------------------------
    y = jnp.dot(w1_ref[...], x_ref[0], preferred_element_type=f32)
    y = jnp.maximum(y + b1_ref[...], 0.0)
    # conv2 must see zero padding of conv1's OUTPUT -> zero the halo lanes.
    y = (y * mask_ref[...]).astype(w2_ref.dtype)           # (Cout, Hp*Wp)

    # ---- im2col: 9 static lane rotations (XLU), stacked on sublanes -------
    # For an interior output lane p, tap (ky, kx) reads y[:, p + (ky-1)*Wp + (kx-1)].
    # Rotation wrap-around only ever feeds halo output lanes (discarded).
    taps = []
    for ky in range(3):
        for kx in range(3):
            d = (ky - 1) * Wp + (kx - 1)
            taps.append(y if d == 0 else jnp.roll(y, -d, axis=1))
    ystack = jnp.concatenate(taps, axis=0)                  # (9*Cout, Hp*Wp)

    # ---- 3x3 conv + bias: ONE MXU matmul with K = 9*Cout -------------------
    out = jnp.dot(w2_ref[...], ystack, preferred_element_type=f32)
    o_ref[0] = (out + b2_ref[...]).astype(o_ref.dtype)


def aff_forward(x1, x2, x4, w1, b1, w2, b2):
    """AFF forward, channels-first NCHW (matches the PyTorch module).

    x1, x2, x4 : (B, C_i, H, W)     features to fuse (same spatial size)
    w1 : (Cout, Cin, 1, 1)          Cin = C1 + C2 + C4
    b1 : (Cout,)
    w2 : (Cout, Cout, 3, 3)
    b2 : (Cout,)
    returns (B, Cout, H, W)
    """
    B, C1, H, W = x1.shape
    C2, C4 = x2.shape[1], x4.shape[1]
    Cin = C1 + C2 + C4
    Cout = w1.shape[0]
    assert w1.shape == (Cout, Cin, 1, 1), w1.shape
    assert w2.shape == (Cout, Cout, 3, 3), w2.shape
    assert x2.shape[2:] == (H, W) and x4.shape[2:] == (H, W)
    Hp, Wp = H + 2, W + 2

    # torch.cat + zero spatial padding, flattened so spatial sits on lanes.
    x = jnp.concatenate([x1, x2, x4], axis=1)                       # (B,Cin,H,W)
    xp = jnp.pad(x, ((0, 0), (0, 0), (1, 1), (1, 1))).reshape(B, Cin, Hp * Wp)

    # interior mask: suppress relu(b1) on the padding ring of conv1's output.
    mask = jnp.pad(jnp.ones((H, W), jnp.float32),
                   ((1, 1), (1, 1))).reshape(1, Hp * Wp)

    dt = x1.dtype
    w1r = w1.reshape(Cout, Cin).astype(dt)                          # (Cout, Cin)
    b1r = b1.reshape(Cout, 1).astype(jnp.float32)
    # columns ordered (ky, kx, cin) to match the im2col sublane stacking.
    w2r = jnp.transpose(w2, (0, 2, 3, 1)).reshape(Cout, 9 * Cout).astype(dt)
    b2r = b2.reshape(Cout, 1).astype(jnp.float32)

    kernel = functools.partial(_aff_kernel, Wp=Wp)

    out_flat = pl.pallas_call(
        kernel,
        out_shape=jax.ShapeDtypeStruct((B, Cout, Hp * Wp), dt),
        grid_spec=pltpu.PrefetchScalarGridSpec(
            num_scalar_prefetch=0,
            # TODO(synk): for large H*W, add a parallel row-block grid axis
            # (1-row halo) so v7x's two TensorCores / the DMA pipeline have
            # more steps to overlap; unnecessary at these shapes.
            grid=(B,),
            in_specs=[
                pl.BlockSpec((1, Cin, Hp * Wp), lambda b: (b, 0, 0)),   # x
                pl.BlockSpec((1, Hp * Wp), lambda b: (0, 0)),           # mask
                pl.BlockSpec((Cout, Cin), lambda b: (0, 0)),            # w1
                pl.BlockSpec((Cout, 1), lambda b: (0, 0)),              # b1
                pl.BlockSpec((Cout, 9 * Cout), lambda b: (0, 0)),       # w2
                pl.BlockSpec((Cout, 1), lambda b: (0, 0)),              # b2
            ],
            out_specs=pl.BlockSpec((1, Cout, Hp * Wp), lambda b: (b, 0, 0)),
        ),
        compiler_params=pltpu.CompilerParams(
            dimension_semantics=("parallel",)),
    )(xp, mask, w1r, b1r, w2r, b2r)

    # keep only the interior pixels of the padded output grid
    return out_flat.reshape(B, Cout, Hp, Wp)[:, :, 1:-1, 1:-1]


def _reference(x1, x2, x4, w1, b1, w2, b2):
    """Pure-JAX (XLA) reference with identical semantics, channels-first."""
    x = jnp.concatenate([x1, x2, x4], axis=1)
    y = lax.conv_general_dilated(x, w1, (1, 1), "SAME",
                                 dimension_numbers=("NCHW", "OIHW", "NCHW"),
                                 precision=lax.Precision.HIGHEST)
    y = jnp.maximum(y + b1.reshape(1, -1, 1, 1), 0.0)
    z = lax.conv_general_dilated(y, w2, (1, 1), "SAME",
                                 dimension_numbers=("NCHW", "OIHW", "NCHW"),
                                 precision=lax.Precision.HIGHEST)
    return (z + b2.reshape(1, -1, 1, 1)).astype(x1.dtype)


if __name__ == "__main__":
    key = jax.random.PRNGKey(0)
    k1, k2, k3, kw1, kb1, kw2, kb2 = jax.random.split(key, 7)

    B, H, W = 2, 16, 16
    C1, C2, C4 = 4, 4, 8            # in_channel = 16
    Cout = 8                        # out_channel = 8

    x1 = jax.random.normal(k1, (B, C1, H, W), dtype=jnp.float32)
    x2 = jax.random.normal(k2, (B, C2, H, W), dtype=jnp.float32)
    x4 = jax.random.normal(k3, (B, C4, H, W), dtype=jnp.float32)

    Cin = C1 + C2 + C4
    w1 = 0.1 * jax.random.normal(kw1, (Cout, Cin, 1, 1), dtype=jnp.float32)
    b1 = 0.1 * jax.random.normal(kb1, (Cout,), dtype=jnp.float32)
    w2 = 0.1 * jax.random.normal(kw2, (Cout, Cout, 3, 3), dtype=jnp.float32)
    b2 = 0.1 * jax.random.normal(kb2, (Cout,), dtype=jnp.float32)

    out = jax.jit(aff_forward)(x1, x2, x4, w1, b1, w2, b2)
    out = jax.block_until_ready(out)
    assert out.shape == (B, Cout, H, W), out.shape

    ref = jax.block_until_ready(_reference(x1, x2, x4, w1, b1, w2, b2))
    err = float(jnp.max(jnp.abs(out - ref)))
    # kernel uses default (fast bf16-pass) MXU precision; reference is HIGHEST,
    # so allow a loose-but-safe tolerance.
    assert jnp.allclose(out, ref, atol=3e-2, rtol=3e-2), err

    print("KERNEL_OK")
</pallas_src>

<mosaic_0001>
module attributes {stable_mosaic.version = 11 : i64} {
  func.func @_aff_kernel(%arg0: i32, %arg1: memref<1x16x324xf32, #tpu.memory_space<vmem>>, %arg2: memref<1x324xf32, #tpu.memory_space<vmem>>, %arg3: memref<8x16xf32, #tpu.memory_space<vmem>>, %arg4: memref<8x1xf32, #tpu.memory_space<vmem>>, %arg5: memref<8x72xf32, #tpu.memory_space<vmem>>, %arg6: memref<8x1xf32, #tpu.memory_space<vmem>>, %arg7: memref<1x8x324xf32, #tpu.memory_space<vmem>>) attributes {dimension_semantics = [#tpu.dimension_semantics<parallel>], iteration_bounds = array<i64: 2>, scalar_prefetch = 0 : i64, scratch_operands = 0 : i64, tpu.core_type = #tpu.core_type<tc>, window_params = [{transform_indices = @transform_0, window_bounds = array<i64: 1, 16, 324>}, {pipeline_mode = #tpu.pipeline_mode<synchronous>, transform_indices = @transform_1, window_bounds = array<i64: 1, 324>}, {pipeline_mode = #tpu.pipeline_mode<synchronous>, transform_indices = @transform_2, window_bounds = array<i64: 8, 16>}, {pipeline_mode = #tpu.pipeline_mode<synchronous>, transform_indices = @transform_3, window_bounds = array<i64: 8, 1>}, {pipeline_mode = #tpu.pipeline_mode<synchronous>, transform_indices = @transform_4, window_bounds = array<i64: 8, 72>}, {pipeline_mode = #tpu.pipeline_mode<synchronous>, transform_indices = @transform_5, window_bounds = array<i64: 8, 1>}, {transform_indices = @transform_6, window_bounds = array<i64: 1, 8, 324>}]} {
    %c0 = arith.constant 0 : index
    %c0_0 = arith.constant 0 : index
    %0 = vector.load %arg3[%c0, %c0_0] : memref<8x16xf32, #tpu.memory_space<vmem>>, vector<8x16xf32>
    %c0_1 = arith.constant 0 : index
    %c0_2 = arith.constant 0 : index
    %c0_3 = arith.constant 0 : index
    %1 = vector.load %arg1[%c0_1, %c0_2, %c0_3] : memref<1x16x324xf32, #tpu.memory_space<vmem>>, vector<1x16x324xf32>
    %2 = vector.shape_cast %1 : vector<1x16x324xf32> to vector<16x324xf32>
    %cst = arith.constant dense<0.000000e+00> : vector<8x324xf32>
    %3 = tpu.matmul %0, %2, %cst {dimension_numbers = #tpu.dot_dimension_numbers<[1], [0], [0], [1], [0, 0, 1, 1], [], []>} : vector<8x16xf32>, vector<16x324xf32>, vector<8x324xf32> -> vector<8x324xf32>
    %c0_4 = arith.constant 0 : index
    %c0_5 = arith.constant 0 : index
    %4 = vector.load %arg4[%c0_4, %c0_5] : memref<8x1xf32, #tpu.memory_space<vmem>>, vector<8x1xf32>
    %5 = vector.broadcast %4 : vector<8x1xf32> to vector<8x324xf32>
    %6 = arith.addf %3, %5 : vector<8x324xf32>
    %cst_6 = arith.constant 0.000000e+00 : f32
    %7 = vector.broadcast %cst_6 : f32 to vector<8x324xf32>
    %8 = arith.maximumf %6, %7 : vector<8x324xf32>
    %c0_7 = arith.constant 0 : index
    %c0_8 = arith.constant 0 : index
    %9 = vector.load %arg2[%c0_7, %c0_8] : memref<1x324xf32, #tpu.memory_space<vmem>>, vector<1x324xf32>
    %10 = vector.broadcast %9 : vector<1x324xf32> to vector<8x324xf32>
    %11 = arith.mulf %8, %10 : vector<8x324xf32>
    %12 = vector.extract_strided_slice %11 {offsets = [0, 305], sizes = [8, 19], strides = [1, 1]} : vector<8x324xf32> to vector<8x19xf32>
    %13 = vector.extract_strided_slice %11 {offsets = [0, 0], sizes = [8, 305], strides = [1, 1]} : vector<8x324xf32> to vector<8x305xf32>
    %14 = tpu.concatenate %12, %13 in 1 : vector<8x19xf32>, vector<8x305xf32> -> vector<8x324xf32>
    %15 = vector.extract_strided_slice %11 {offsets = [0, 306], sizes = [8, 18], strides = [1, 1]} : vector<8x324xf32> to vector<8x18xf32>
    %16 = vector.extract_strided_slice %11 {offsets = [0, 0], sizes = [8, 306], strides = [1, 1]} : vector<8x324xf32> to vector<8x306xf32>
    %17 = tpu.concatenate %15, %16 in 1 : vector<8x18xf32>, vector<8x306xf32> -> vector<8x324xf32>
    %18 = vector.extract_strided_slice %11 {offsets = [0, 307], sizes = [8, 17], strides = [1, 1]} : vector<8x324xf32> to vector<8x17xf32>
    %19 = vector.extract_strided_slice %11 {offsets = [0, 0], sizes = [8, 307], strides = [1, 1]} : vector<8x324xf32> to vector<8x307xf32>
    %20 = tpu.concatenate %18, %19 in 1 : vector<8x17xf32>, vector<8x307xf32> -> vector<8x324xf32>
    %21 = vector.extract_strided_slice %11 {offsets = [0, 323], sizes = [8, 1], strides = [1, 1]} : vector<8x324xf32> to vector<8x1xf32>
    %22 = vector.extract_strided_slice %11 {offsets = [0, 0], sizes = [8, 323], strides = [1, 1]} : vector<8x324xf32> to vector<8x323xf32>
    %23 = tpu.concatenate %21, %22 in 1 : vector<8x1xf32>, vector<8x323xf32> -> vector<8x324xf32>
    %24 = vector.extract_strided_slice %11 {offsets = [0, 1], sizes = [8, 323], strides = [1, 1]} : vector<8x324xf32> to vector<8x323xf32>
    %25 = vector.extract_strided_slice %11 {offsets = [0, 0], sizes = [8, 1], strides = [1, 1]} : vector<8x324xf32> to vector<8x1xf32>
    %26 = tpu.concatenate %24, %25 in 1 : vector<8x323xf32>, vector<8x1xf32> -> vector<8x324xf32>
    %27 = vector.extract_strided_slice %11 {offsets = [0, 17], sizes = [8, 307], strides = [1, 1]} : vector<8x324xf32> to vector<8x307xf32>
    %28 = vector.extract_strided_slice %11 {offsets = [0, 0], sizes = [8, 17], strides = [1, 1]} : vector<8x324xf32> to vector<8x17xf32>
    %29 = tpu.concatenate %27, %28 in 1 : vector<8x307xf32>, vector<8x17xf32> -> vector<8x324xf32>
    %30 = vector.extract_strided_slice %11 {offsets = [0, 18], sizes = [8, 306], strides = [1, 1]} : vector<8x324xf32> to vector<8x306xf32>
    %31 = vector.extract_strided_slice %11 {offsets = [0, 0], sizes = [8, 18], strides = [1, 1]} : vector<8x324xf32> to vector<8x18xf32>
    %32 = tpu.concatenate %30, %31 in 1 : vector<8x306xf32>, vector<8x18xf32> -> vector<8x324xf32>
    %33 = vector.extract_strided_slice %11 {offsets = [0, 19], sizes = [8, 305], strides = [1, 1]} : vector<8x324xf32> to vector<8x305xf32>
    %34 = vector.extract_strided_slice %11 {offsets = [0, 0], sizes = [8, 19], strides = [1, 1]} : vector<8x324xf32> to vector<8x19xf32>
    %35 = tpu.concatenate %33, %34 in 1 : vector<8x305xf32>, vector<8x19xf32> -> vector<8x324xf32>
    %36 = tpu.concatenate %14, %17, %20, %23, %11, %26, %29, %32, %35 in 0 : vector<8x324xf32>, vector<8x324xf32>, vector<8x324xf32>, vector<8x324xf32>, vector<8x324xf32>, vector<8x324xf32>, vector<8x324xf32>, vector<8x324xf32>, vector<8x324xf32> -> vector<72x324xf32>
    %c0_9 = arith.constant 0 : index
    %c0_10 = arith.constant 0 : index
    %37 = vector.load %arg5[%c0_9, %c0_10] : memref<8x72xf32, #tpu.memory_space<vmem>>, vector<8x72xf32>
    %cst_11 = arith.constant dense<0.000000e+00> : vector<8x324xf32>
    %38 = tpu.matmul %37, %36, %cst_11 {dimension_numbers = #tpu.dot_dimension_numbers<[1], [0], [0], [1], [0, 0, 1, 1], [], []>} : vector<8x72xf32>, vector<72x324xf32>, vector<8x324xf32> -> vector<8x324xf32>
    %c0_12 = arith.constant 0 : index
    %c0_13 = arith.constant 0 : index
    %39 = vector.load %arg6[%c0_12, %c0_13] : memref<8x1xf32, #tpu.memory_space<vmem>>, vector<8x1xf32>
    %40 = vector.broadcast %39 : vector<8x1xf32> to vector<8x324xf32>
    %41 = arith.addf %38, %40 : vector<8x324xf32>
    %c0_14 = arith.constant 0 : index
    %c0_15 = arith.constant 0 : index
    %c0_16 = arith.constant 0 : index
    %42 = vector.load %arg7[%c0_14, %c0_15, %c0_16] : memref<1x8x324xf32, #tpu.memory_space<vmem>>, vector<1x8x324xf32>
    %43 = vector.shape_cast %42 : vector<1x8x324xf32> to vector<8x324xf32>
    %44 = vector.shape_cast %41 : vector<8x324xf32> to vector<1x8x324xf32>
    tpu.vector_store %arg7[%c0_14, %c0_15, %c0_16], %44 {strides = array<i32>} : memref<1x8x324xf32, #tpu.memory_space<vmem>>, vector<1x8x324xf32>,
    return
  }
  func.func @transform_0(%arg0: i32) -> (i32, i32, i32) {
    %c0_i32 = arith.constant 0 : i32
    %c0_i32_0 = arith.constant 0 : i32
    %c0_i32_1 = arith.constant 0 : i32
    return %arg0, %c0_i32, %c0_i32_0 : i32, i32, i32
  }
  func.func @transform_1(%arg0: i32) -> (i32, i32) {
    %c0_i32 = arith.constant 0 : i32
    %c0_i32_0 = arith.constant 0 : i32
    %c0_i32_1 = arith.constant 0 : i32
    return %c0_i32, %c0_i32_0 : i32, i32
  }
  func.func @transform_2(%arg0: i32) -> (i32, i32) {
    %c0_i32 = arith.constant 0 : i32
    %c0_i32_0 = arith.constant 0 : i32
    %c0_i32_1 = arith.constant 0 : i32
    return %c0_i32, %c0_i32_0 : i32, i32
  }
  func.func @transform_3(%arg0: i32) -> (i32, i32) {
    %c0_i32 = arith.constant 0 : i32
    %c0_i32_0 = arith.constant 0 : i32
    %c0_i32_1 = arith.constant 0 : i32
    return %c0_i32, %c0_i32_0 : i32, i32
  }
  func.func @transform_4(%arg0: i32) -> (i32, i32) {
    %c0_i32 = arith.constant 0 : i32
    %c0_i32_0 = arith.constant 0 : i32
    %c0_i32_1 = arith.constant 0 : i32
    return %c0_i32, %c0_i32_0 : i32, i32
  }
  func.func @transform_5(%arg0: i32) -> (i32, i32) {
    %c0_i32 = arith.constant 0 : i32
    %c0_i32_0 = arith.constant 0 : i32
    %c0_i32_1 = arith.constant 0 : i32
    return %c0_i32, %c0_i32_0 : i32, i32
  }
  func.func @transform_6(%arg0: i32) -> (i32, i32, i32) {
    %c0_i32 = arith.constant 0 : i32
    %c0_i32_0 = arith.constant 0 : i32
    %c0_i32_1 = arith.constant 0 : i32
    return %arg0, %c0_i32, %c0_i32_0 : i32, i32, i32
  }
}

</mosaic_0001>

<bundles_post_ra>
// kernel: aff_forward.1
= control target key start
LH: loop header
LB: loop body
LE: loop exit
PB: predicated region body
PF: predicated region fallthrough
CT: control target
= control target key end

     0   :  { %s997_s21 = smov 0   ;;  %s1104_s0 = inlined_call_operand.vmem [shape: f32[2,16,324], index: 0, kind: input, shape index: {}]   ;;  %s1105_s1 = inlined_call_operand.vmem [shape: f32[1,324], index: 1, kind: input, shape index: {}]   ;;  %s1106_s2 = inlined_call_operand.vmem [shape: f32[8,16], index: 2, kind: input, shape index: {}]   ;;  %s1107_s3 = inlined_call_operand.vmem [shape: f32[8,1], index: 3, kind: input, shape index: {}]   ;;  %s1108_s4 = inlined_call_operand.vmem [shape: f32[8,72], index: 4, kind: input, shape index: {}]   ;;  %s1109_s5 = inlined_call_operand.vmem [shape: f32[8,1], index: 5, kind: input, shape index: {}]   ;;  %s1110_s6 = inlined_call_operand.vmem [shape: f32[2,8,324], index: 6, kind: output, shape index: {}]  }
   0x1 LB: > { %s779_s22 = sadd.s32 4294967295, %s940_s21   ;;  %p783_p0 = scmp.ge.s32.totalorder %s940_s21, 1  ;;  %s940_s21 = sphi %s997_s21, %s16_s21  }
   0x2   : > { %p212_p1 = scmp.lt.s32.totalorder %s940_s21, 3 }
   0x4   : > { %p213_p2 = pnand %p783_p0, %p212_p1 }
   0x5   : > { %p242_p3 = scmp.lt.s32.totalorder (!%p213_p2), %s779_s22, 1  ;;  %v942_v0 = vmov (!%p213_p2), 0.0|0.0   ;;  %vm943_vm0 = vmmov (!%p213_p2), 0   ;;  %v944_v1 = vmov (!%p213_p2), 0.0   ;;  %v259_v2 = vld [vmem:[%s1107_s3] sm:$0xff] (!%p213_p2)  ;;  %v945_v3 = vmov (!%p213_p2), 0  }
   0x6   : > { %216 = sbr.rel (%p213_p2) target bundleno = 624 (0x270), region = 44  ;;  %837 = vmatprep.subr.bf16.mxu1 (!%p213_p2), %v942_v0  ;;  %809 = vmatprep.mubr.msk.f32.mxu1 (!%p213_p2), %vm943_vm0, %v944_v1  ;;  %v252_v13 = vld [vmem:[%s1106_s2] sm:$0xff] (!%p213_p2)  ;;  %vm265_vm1 = vcmask (!%p213_p2), 130048   ;;  %v415_v14 = vlaneseq (!%p213_p2)  ;;  %s946_s9 = smov (!%p213_p2), 78   ;;  %vm461_vm2 = vcmask (!%p213_p2), 146432   ;;  %vm445_vm3 = vcmask (!%p213_p2), 154624  }
   0x7   : > { %333 = vmatprep.mubr.f32.mxu0 (!%p213_p2), %v944_v1  ;;  %898 = vset.pattern.permute.xlu0 (!%p213_p2), %v945_v3  ;;  %v413_v18 = vld [vmem:[%s1105_s1] sm:$0x7] (!%p213_p2)  ;;  %s947_s10 = smov (!%p213_p2), 79   ;;  %s948_s11 = smov (!%p213_p2), 18   ;;  %vm477_vm4 = vcmask (!%p213_p2), 138240   ;;  %vm493_vm5 = vcmask (!%p213_p2), 7168  }
   0x8   : > { %262 = vperm.xlu0 (!%p213_p2), %898, %v259_v2   ;;  %v416_v15 = vshrl.u32 (!%p213_p2), %v415_v14, 7  ;;  %s949_s12 = smov (!%p213_p2), 19   ;;  %s950_s13 = smov (!%p213_p2), 61   ;;  %v569_v39 = vld [vmem:[%s1109_s5] sm:$0xff] (!%p213_p2)  ;;  %vm506_vm6 = vcmask (!%p213_p2), 1039360   ;;  %vm515_vm7 = vcmask (!%p213_p2), 547840  }
   0x9   : > { %s951_s14 = smov (!%p213_p2), 77   ;;  %s952_s15 = smov (!%p213_p2), 1   ;;  %vm523_vm8 = vcmask (!%p213_p2), 908288   ;;  %vm532_vm9 = vcmask (!%p213_p2), 416768   ;;  %vm540_vm10 = vcmask (!%p213_p2), 900096   ;;  %vm549_vm11 = vcmask (!%p213_p2), 408576  }
   0xa   : > { %v425_v16 = vsub.s32 (!%p213_p2), 2, %v416_v15  ;;  %v417_v28 = vsub.s32 (!%p213_p2), 0, %v416_v15  ;;  %v421_v32 = vsub.s32 (!%p213_p2), 1, %v416_v15  ;;  %s953_s16 = smov (!%p213_p2), 17   ;;  %s954_s17 = smov (!%p213_p2), 67   ;;  %vm557_vm12 = vcmask (!%p213_p2), 891904  }
   0xb   : > { %s955_s18 = smov (!%p213_p2), 127   ;;  %s956_s19 = smov (!%p213_p2), 110   ;;  %vm566_vm13 = vcmask (!%p213_p2), 400384   ;;  %vm575_vm14 = vcmask (!%p213_p2), 588800   ;;  %vm722_vm15 = vcmask (!%p213_p2), 556032  }
   0xc   : > { %v426_v22 = vrot.slane (!%p213_p2), %v413_v18, %v425_v16  ;;  %v418_v30 = vrot.slane (!%p213_p2), %v413_v18, %v417_v28  ;;  %v422_v35 = vrot.slane (!%p213_p2), %v413_v18, %v421_v32  ;;  %s957_s20 = smov (!%p213_p2), 111   ;;  %s958_s23 = smov (!%p213_p2), 50  }
   0xd   : > { %s1112_s22 = smov (!%p242_p3, %s779_s22), 1  ;;  %s959_s24 = smov 51  }
   0xe   : > { %s868_s25 = smul.u32 48, %s1112_s22 }
   0xf   : > { %s869_s7 = smul.u32 24, %s1112_s22 }
  0x10   : > { %s246_s28 = scalar_lea.vmem %s1104_s0, %s868_s25  ;;  %s960_s25 = smov 109  }
  0x11   : > { %v254_v4 = vld [vmem:[%s246_s28 + $0x8] sm:$0xff]  ;;  %v257_v5 = vld [vmem:[%s246_s28 + $0x20] sm:$0xff]  ;;  %v255_v6 = vld [vmem:[%s246_s28 + $0x10] sm:$0xff] }
  0x12   : > { %v833_v7 = vpack.c.bf16 %v257_v5, %v254_v4  ;;  %v258_v8 = vld [vmem:[%s246_s28 + $0x28] sm:$0xff]  ;;  %v253_v9 = vld [vmem:[%s246_s28] sm:$0xff]  ;;  %v256_v10 = vld [vmem:[%s246_s28 + $0x18] sm:$0xff]  ;;  %s961_s28 = smov 49  }
  0x13   : > { %v838_v11 = vpack.c.bf16 %v258_v8, %v255_v6  ;;  %v835_v12 = vpack.c.bf16 %v256_v10, %v253_v9 }
  0x14   : > { %834 = vmatprep.subr.bf16.mxu0 %v833_v7 }
  0x15   : > { %839 = vmatpush3.bf16.msra.mxu1 %v838_v11  ;;  %836 = vmatpush1.bf16.msra.mxu0 %v835_v12 }
  0x16   : > { %856 = vmatprep.subr.bf16.mxu1 %v942_v0 }
  0x18   : > { %810 = vmatmul.mubr.msk.f32.vlgmr.msra.gmra.mrb[0].mxu1 %vm265_vm1, %v252_v13  ;;  %786 = vmatmul.mubr.msk.f32.vlgmr.msra.gmra.mrb[0].mxu0 %vm265_vm1, %v252_v13 }
  0x19   : > { %830 = vmatprep.mubr.msk.f32.mxu1 %vm943_vm0, %v944_v1  ;;  %643 = vmatprep.mubr.f32.mxu0 %v944_v1 }
  0x87   : > { %v263_v17 = vpop.permute.xlu0 %262 }
  0xeb   : > { %v406_v19 = vpop.f32.mrb[0].mxu1  ;;  %v335_v20 = vpop.f32.mrb[0].mxu0 }
  0xec   : > { %v407_v21 = vadd.f32 %v406_v19, %v263_v17  ;;  %v811_v23 = vpop.f32.mrb[1].mxu1  ;;  %v337_v24 = vpop.f32.mrb[1].mxu0  ;;  %v336_v27 = vadd.f32 %v335_v20, %v263_v17 }
  0xed   : > { %v338_v31 = vadd.f32 %v337_v24, %v263_v17 }
  0xee   : > { %v412_v25 = vmax.f32 %v407_v21, 0.0  ;;  %v410_v29 = vmax.f32 %v336_v27, 0.0 }
  0xef   : > { %v411_v34 = vmax.f32 %v338_v31, 0.0 }
  0xf0   : > { %v1028_v26 = vmul.f32 %v426_v22, %v412_v25  ;;  %v1040_v33 = vmul.f32 %v418_v30, %v410_v29 }
  0xf1   : > { %v1044_v36 = vmul.f32 %v422_v35, %v411_v34 }
  0xf2   : > { %452 = vrot.lane.b32.xlu0 %v1028_v26, %s946_s9  ;;  %434 = vrot.lane.b32.xlu1 %v1028_v26, %s947_s10  ;;  %s251_s10 = scalar_lea.vmem %s1110_s6, %s869_s7 }
  0xf3   : > { %v904_v37 = vpack.i.bf16 %v1044_v36, %v1040_v33  ;;  %v919_v38 = vpack.i.bf16 %v1028_v26, %v1044_v36 }
  0xf6   : > { %459 = vrot.lane.b32.xlu0 %v1028_v26, %s948_s11  ;;  %443 = vrot.lane.b32.xlu1 %v1028_v26, %s949_s12 }
  0xfa   : > { %484 = vrot.lane.b32.xlu0 %v1028_v26, %s950_s13  ;;  %468 = vrot.lane.b32.xlu1 %v1028_v26, %s951_s14 }
  0xfe   : > { %491 = vrot.lane.b32.xlu0 %v1028_v26, %s952_s15  ;;  %475 = vrot.lane.b32.xlu1 %v1028_v26, %s953_s16 }
 0x102   : > { %512 = vrot.lane.b32.xlu1 %v1040_v33, %s954_s17  ;;  %500 = vrot.lane.b32.xlu0 %v1040_v33, %s955_s18 }
 0x106   : > { %534 = vrot.lane.b32.xlu1 %v1040_v33, %s956_s19  ;;  %517 = vrot.lane.b32.xlu0 %v1040_v33, %s957_s20 }
 0x10a   : > { %905 = vrot.lane.b32.xlu1 %v904_v37, %s948_s11  ;;  %900 = vrot.lane.b32.xlu0 %v904_v37, %s949_s12 }
 0x10e   : > { %910 = vrot.lane.b32.xlu1 %v904_v37, %s953_s16  ;;  %915 = vrot.lane.b32.xlu0 %v904_v37, %s952_s15 }
 0x112   : > { %546 = vrot.lane.b32.xlu1 %v1040_v33, %s958_s23  ;;  %529 = vrot.lane.b32.xlu0 %v1040_v33, %s959_s24 }
 0x116   : > { %920 = vrot.lane.b32.xlu1 %v919_v38, %s955_s18  ;;  %925 = vrot.lane.b32.xlu0 %v919_v38, %s957_s20 }
 0x11a   : > { %930 = vrot.lane.b32.xlu1 %v919_v38, %s956_s19  ;;  %553 = vrot.lane.b32.xlu0 %v1044_v36, %s960_s25 }
 0x11e   : > { %555 = vrot.lane.b32.xlu1 %v1028_v26, %s960_s25  ;;  %551 = vrot.lane.b32.xlu0 %v1040_v33, %s960_s25 }
 0x122   : > { %563 = vrot.lane.b32.xlu1 %v1040_v33, %s961_s28  ;;  %572 = vperm.xlu0 %898, %v569_v39  }
 0x164   : > { %v453_v40 = vpop.permute.xlu0 %452  ;;  %v435_v41 = vpop.permute.xlu1 %434 }
 0x168   : > { %v460_v42 = vpop.permute.xlu0 %459  ;;  %v444_v43 = vpop.permute.xlu1 %443 }
 0x16c   : > { %v485_v44 = vpop.permute.xlu0 %484  ;;  %v469_v45 = vpop.permute.xlu1 %468 }
 0x170   : > { %v492_v46 = vpop.permute.xlu0 %491  ;;  %v476_v47 = vpop.permute.xlu1 %475 }
 0x174   : > { %v513_v48 = vpop.permute.xlu1 %512  ;;  %v501_v49 = vpop.permute.xlu0 %500 }
 0x178   : > { %v1063_v50 = vpop.permute.xlu1 %534  ;;  %v1065_v51 = vpop.permute.xlu0 %517 }
 0x17c   : > { %v906_v52 = vpop.permute.xlu1 %905  ;;  %v901_v53 = vpop.permute.xlu0 %900 }
 0x17d   : > { %v908_v54 = vunpack.i.h.bf16 %v906_v52  ;;  %v907_v55 = vunpack.i.l.bf16 %v906_v52  ;;  %v903_v56 = vunpack.i.h.bf16 %v901_v53  ;;  %v902_v57 = vunpack.i.l.bf16 %v901_v53 }
 0x17f   : > { %v463_v58 = vsel %vm461_vm2, %v908_v54, %v460_v42  ;;  %v467_v59 = vsel %vm461_vm2, %v453_v40, %v907_v55  ;;  %v447_v60 = vsel %vm445_vm3, %v903_v56, %v444_v43  ;;  %v451_v61 = vsel %vm445_vm3, %v435_v41, %v902_v57 }
 0x180   : > { %v857_v62 = vpack.c.bf16 %v463_v58, %v447_v60  ;;  %v842_v63 = vpack.c.bf16 %v467_v59, %v451_v61  ;;  %v911_v2 = vpop.permute.xlu1 %910  ;;  %v916_v3 = vpop.permute.xlu0 %915  ;;  %v446_v4 = vsel %vm445_vm3, %v902_v57, %v903_v56  ;;  %v462_v5 = vsel %vm461_vm2, %v907_v55, %v908_v54 }
 0x181   : > { %v913_v6 = vunpack.i.h.bf16 %v911_v2  ;;  %v912_v7 = vunpack.i.l.bf16 %v911_v2  ;;  %v918_v8 = vunpack.i.h.bf16 %v916_v3  ;;  %v917_v9 = vunpack.i.l.bf16 %v916_v3 }
 0x182   : > { %v840_v10 = vpack.c.bf16 %v462_v5, %v446_v4  ;;  %858 = vmatpush3.bf16.msra.mxu1 %v857_v62 }
 0x183   : > { %v479_v11 = vsel %vm477_vm4, %v913_v6, %v476_v47  ;;  %v483_v12 = vsel %vm477_vm4, %v469_v45, %v912_v7  ;;  %v495_v13 = vsel %vm493_vm5, %v918_v8, %v492_v46  ;;  %v499_v14 = vsel %vm493_vm5, %v485_v44, %v917_v9  ;;  %859 = vmatprep.subr.bf16.mxu1 %v942_v0 }
 0x184   : > { %v860_v15 = vpack.c.bf16 %v495_v13, %v479_v11  ;;  %841 = vmatprep.subr.bf16.mxu0 %v840_v10  ;;  %v547_v16 = vpop.permute.xlu1 %546  ;;  %v530_v17 = vpop.permute.xlu0 %529  ;;  %v478_v18 = vsel %vm477_vm4, %v912_v7, %v913_v6  ;;  %v494_v19 = vsel %vm493_vm5, %v917_v9, %v918_v8  ;;  %v846_v20 = vpack.c.bf16 %v499_v14, %v483_v12 }
 0x185   : > { %843 = vmatpush1.bf16.msra.mxu0 %v842_v63  ;;  %v844_v21 = vpack.c.bf16 %v494_v19, %v478_v18 }
 0x186   : > { %861 = vmatpush3.bf16.msra.mxu1 %v860_v15 }
 0x187   : > { %845 = vmatprep.subr.bf16.mxu0 %v844_v21  ;;  %862 = vmatprep.subr.bf16.mxu1 %v942_v0 }
 0x188   : > { %v921_v22 = vpop.permute.xlu1 %920  ;;  %v926_v23 = vpop.permute.xlu0 %925 }
 0x189   : > { %847 = vmatpush1.bf16.msra.mxu0 %v846_v20  ;;  %v923_v24 = vunpack.i.h.bf16 %v921_v22  ;;  %v922_v25 = vunpack.i.l.bf16 %v921_v22  ;;  %v928_v27 = vunpack.i.h.bf16 %v926_v23  ;;  %v927_v28 = vunpack.i.l.bf16 %v926_v23 }
 0x18b   : > { %v516_v29 = vsel %vm515_vm7, %v923_v24, %v513_v48  ;;  %v507_v30 = vsel %vm506_vm6, %v501_v49, %v922_v25  ;;  %v508_v35 = vsel %vm506_vm6, %v922_v25, %v923_v24  ;;  %v533_v40 = vsel %vm532_vm9, %v928_v27, %v530_v17 }
 0x18c   : > { %v863_v31 = vpack.c.bf16 %v516_v29, %v1028_v26  ;;  %v850_v32 = vpack.c.bf16 %v507_v30, %v1040_v33  ;;  %v931_v34 = vpop.permute.xlu1 %930  ;;  %v848_v39 = vpack.c.bf16 %v508_v35, %v1044_v36  ;;  %v524_v41 = vsel %vm523_vm8, %v1065_v51, %v927_v28  ;;  %v554_v42 = vpop.permute.xlu0 %553 }
 0x18d   : > { %v933_v37 = vunpack.i.h.bf16 %v931_v34  ;;  %v932_v38 = vunpack.i.l.bf16 %v931_v34  ;;  %v525_v43 = vsel %vm523_vm8, %v927_v28, %v928_v27 }
 0x18e   : > { %864 = vmatpush3.bf16.msra.mxu1 %v863_v31  ;;  %849 = vmatprep.subr.bf16.mxu0 %v848_v39 }
 0x18f   : > { %v550_v44 = vsel %vm549_vm11, %v933_v37, %v547_v16  ;;  %v541_v26 = vsel %vm540_vm10, %v1063_v50, %v932_v38  ;;  %865 = vmatprep.subr.bf16.mxu1 %v942_v0  ;;  %v542_v33 = vsel %vm540_vm10, %v932_v38, %v933_v37  ;;  %851 = vmatpush1.bf16.msra.mxu0 %v850_v32  ;;  %v568_v0 = vld [vmem:[%s1108_s4] sm:$0xff] }
 0x190   : > { %v854_v45 = vpack.c.bf16 %v541_v26, %v524_v41  ;;  %v866_v46 = vpack.c.bf16 %v550_v44, %v533_v40  ;;  %v556_v36 = vpop.permute.xlu1 %555  ;;  %v852_v47 = vpack.c.bf16 %v542_v33, %v525_v43  ;;  %v552_v48 = vpop.permute.xlu0 %551 }
 0x191   : > { %v559_v50 = vsel %vm557_vm12, %v554_v42, %v556_v36  ;;  %v558_v52 = vsel %vm557_vm12, %v552_v48, %v554_v42 }
 0x192   : > { %853 = vmatprep.subr.bf16.mxu0 %v852_v47  ;;  %867 = vmatpush3.bf16.msra.mxu1 %v866_v46 }
 0x193   : > { %828 = vmatprep.subr.mxu1 %v944_v1  ;;  %855 = vmatpush1.bf16.msra.mxu0 %v854_v45 }
 0x194   : > { %v564_v49 = vpop.permute.xlu1 %563  ;;  %595 = vmatprep.subr.mxu0 %v559_v50 }
 0x195   : > { %v567_v51 = vsel %vm566_vm13, %v556_v36, %v564_v49 }
 0x196   : > { %829 = vmatpush3.msra.mxu1 %v567_v51 }
 0x197   : > { %831 = vmatmul.mubr.msk.f32.vlgmr.msra.gmra.mrb[2].mxu1 %vm575_vm14, %v568_v0  ;;  %596 = vmatpush1.msra.mxu0 %v558_v52 }
 0x198   : > { %788 = vmatmul.mubr.msk.f32.vlgmr.msra.gmra.mrb[2].mxu0 %vm575_vm14, %v568_v0 }
 0x1a1   : > { %v573_v53 = vpop.permute.xlu0 %572 }
 0x26a   : > { %v716_v54 = vpop.f32.mrb[2].mxu1 }
 0x26b   : > { %v717_v1 = vadd.f32 %v716_v54, %v573_v53  ;;  %v832_v55 = vpop.f32.mrb[3].mxu1  ;;  %v645_v56 = vpop.f32.mrb[2].mxu0 }
 0x26c   : > { %v646_v57 = vadd.f32 %v645_v56, %v573_v53  ;;  %v647_v58 = vpop.f32.mrb[3].mxu0 }
 0x26d   : > { %723 = vst.msk [vmem:[%s251_s10 + $0x10] sm:$0xff] %vm722_vm15, %v717_v1  ;;  %v648_v59 = vadd.f32 %v647_v58, %v573_v53 }
 0x26e   : > { %720 = vst [vmem:[%s251_s10] sm:$0xff] %v646_v57 }
 0x26f   : > { %721 = vst [vmem:[%s251_s10 + $0x8] sm:$0xff] %v648_v59 }
 0x270 PF: > { %s16_s21 = sadd.s32 1, %s940_s21  }
 0x271   : > { %p13_p4 = scmp.ge.s32.totalorder %s16_s21, 4  }
 0x273   :  { %15 = sbr.rel (!%p13_p4) target bundleno = 1 (0x1), region = 74 }

</bundles_post_ra>
